<compile_context>
chip_gen: v6e
topology: v6e:2x2x1
jax: 0.10.0
libtpu: 0.0.40
codegen_flags: <defaults>
</compile_context>

<pallas_src>
import functools

import jax
import jax.numpy as jnp
from jax.experimental import pallas as pl
from jax.experimental.pallas import tpu as pltpu


def _self_attention_kernel(k_ref, q_ref, v_ref,
                           wkT_ref, wqT_ref, wvT_ref,
                           woT_ref, bo_ref,
                           out_ref,
                           *, num_heads, head_size):
    # Block shapes: k/q/v_ref (TB, S, E) bf16; w*T_ref (E, fE)/(fE, E) bf16;
    # bo_ref (1, E) f32; out_ref (TB, S, E) f32.
    TB, S, E = q_ref.shape
    fE = wqT_ref.shape[1]
    H, hs = num_heads, head_size
    TBS = TB * S

    # Flatten batch into rows (leading-dim merge only — layout-trivial).
    x_k = k_ref[...].reshape(TBS, E)          # bf16
    x_q = q_ref[...].reshape(TBS, E)
    x_v = v_ref[...].reshape(TBS, E)

    # Projections: bf16 x bf16 on the MXU, f32 accumulation.
    # The 1/sqrt(head_size) score scaling is already baked into wqT (host side).
    q_proj = jnp.dot(x_q, wqT_ref[...], preferred_element_type=jnp.float32)   # (TBS, fE)
    k_proj = jnp.dot(x_k, wkT_ref[...], preferred_element_type=jnp.float32)
    v_proj = jnp.dot(x_v, wvT_ref[...], preferred_element_type=jnp.float32)

    # Split heads into a batched (H*TB, S, hs) layout (batch index = h*TB + b).
    # Static lane slices + leading-dim reshape + axis-0 concat; no .at[].set,
    # no general transposes.
    def split_heads(p):
        p = p.astype(jnp.bfloat16)
        return jnp.concatenate(
            [p[:, h * hs:(h + 1) * hs].reshape(TB, S, hs) for h in range(H)],
            axis=0)                                                            # (H*TB, S, hs)

    qh = split_heads(q_proj)
    kh = split_heads(k_proj)
    vh = split_heads(v_proj)

    # Batched scaled-dot-product attention over all heads / batch rows at once.
    scores = jnp.einsum('bqd,bkd->bqk', qh, kh,
                        preferred_element_type=jnp.float32)                    # (H*TB, S, S) f32
    # TODO(synk): attention mask (scores.masked_fill(mask == 0, -1e9)) not wired
    # in — this kernel implements the mask=None path of the module.
    m = jnp.max(scores, axis=-1, keepdims=True)
    e = jnp.exp(scores - m)                                                    # f32 softmax (v5e-safe)
    denom = jnp.sum(e, axis=-1, keepdims=True)
    probs = e * pl.reciprocal(denom, approx=True)                              # EUP reciprocal
    # Dropout is identity in eval mode (deterministic forward).
    ctx = jnp.einsum('bqk,bkd->bqd', probs.astype(jnp.bfloat16), vh,
                     preferred_element_type=jnp.float32)                       # (H*TB, S, hs) f32

    # Merge heads back to (TBS, fE): leading-dim slices + lane-dim concat.
    unified = jnp.concatenate(
        [ctx[h * TB:(h + 1) * TB].astype(jnp.bfloat16).reshape(TBS, hs)
         for h in range(H)],
        axis=-1)                                                               # (TBS, fE) bf16

    # Output projection (bf16 MXU, f32 accumulate) + f32 bias.
    out = jnp.dot(unified, woT_ref[...],
                  preferred_element_type=jnp.float32) + bo_ref[...]            # (TBS, E) f32
    out_ref[...] = out.reshape(TB, S, E).astype(out_ref.dtype)


def self_attention_pallas(key, query, value, params, *, num_heads,
                          batch_block=None):
    """key/query/value: (B, S, E). params: dict of weights (PyTorch layout)."""
    B, S, E = query.shape
    wk, wq, wv = params["wk"], params["wq"], params["wv"]
    wo, bo = params["wo"], params["bo"]
    fE = wq.shape[0]
    head_size = fE // num_heads

    # Multiple batch elements per grid step (more rows per matmul, fewer steps).
    # Tune batch_block down (toward 1) to expose more "parallel" grid steps for
    # megacore sharding when B is large.
    TB = batch_block if batch_block is not None else min(B, 8)
    assert B % TB == 0, "batch_block must divide batch size"

    # Host-side weight prep: transpose once (kernel computes x @ Wt directly),
    # bake the 1/sqrt(head_size) scaling into Wq, cast matmul operands to bf16.
    scale = head_size ** -0.5   # == applying head_size**-0.25 to both q and k
    wqT = (wq.T * scale).astype(jnp.bfloat16)       # (E, fE)
    wkT = wk.T.astype(jnp.bfloat16)                 # (E, fE)
    wvT = wv.T.astype(jnp.bfloat16)                 # (E, fE)
    woT = wo.T.astype(jnp.bfloat16)                 # (fE, E)
    bo2 = bo.reshape(1, -1).astype(jnp.float32)     # (1, E) — added post-accum in f32

    kb = key.astype(jnp.bfloat16)
    qb = query.astype(jnp.bfloat16)
    vb = value.astype(jnp.bfloat16)

    kernel = functools.partial(_self_attention_kernel,
                               num_heads=num_heads, head_size=head_size)

    seq_spec = pl.BlockSpec((TB, S, E), lambda b: (b, 0, 0))

    def w_spec(shape):
        # Constant index map: weights resident in VMEM across all grid steps.
        # TODO(synk): could be single-buffered (pipeline_mode=pl.Buffered(1)) to
        # reclaim VMEM on v7x; negligible at these weight sizes.
        return pl.BlockSpec(shape, lambda b, _n=len(shape): (0,) * _n)

    return pl.pallas_call(
        kernel,
        out_shape=jax.ShapeDtypeStruct((B, S, E), query.dtype),
        grid_spec=pltpu.PrefetchScalarGridSpec(
            num_scalar_prefetch=0,
            grid=(B // TB,),
            in_specs=[
                seq_spec, seq_spec, seq_spec,
                w_spec(wkT.shape), w_spec(wqT.shape), w_spec(wvT.shape),
                w_spec(woT.shape), w_spec(bo2.shape),
            ],
            out_specs=pl.BlockSpec((TB, S, E), lambda b: (b, 0, 0)),
        ),
        compiler_params=pltpu.CompilerParams(
            dimension_semantics=("parallel",),
            vmem_limit_bytes=48 * 1024 * 1024,   # headroom; raise/flash-tile for long S
        ),
    )(kb, qb, vb, wkT, wqT, wvT, woT, bo2)


def reference_self_attention(key, query, value, params, *, num_heads):
    """Pure-JAX f32 reference mirroring the PyTorch forward exactly."""
    B, S, E = query.shape
    wk, wq, wv = params["wk"], params["wq"], params["wv"]
    wo, bo = params["wo"], params["bo"]
    factor_e = wq.shape[0]
    head_size = factor_e // num_heads

    def proj(x, w):
        return (x @ w.T).reshape(B, S, num_heads, head_size).transpose(0, 2, 1, 3)

    k = proj(key, wk) / head_size ** 0.25
    q = proj(query, wq) / head_size ** 0.25
    v = proj(value, wv)
    scores = jnp.einsum("bhqd,bhkd->bhqk", q, k)
    scores = jax.nn.softmax(scores, axis=-1)
    out = jnp.einsum("bhqk,bhkd->bhqd", scores, v)
    out = out.transpose(0, 2, 1, 3).reshape(B, S, factor_e)
    return out @ wo.T + bo


if __name__ == "__main__":
    # Small shapes consistent with the module: wide_attention=False -> factor=1
    B, S, E = 2, 8, 32
    num_heads = 4
    factor = 1  # wide_attention=False

    root = jax.random.PRNGKey(0)
    k_keys = jax.random.split(root, 8)

    # Deterministic parameter init (PyTorch weight layout: (out, in)).
    wk = jax.random.normal(k_keys[0], (factor * E, E), jnp.float32) * 0.1
    wq = jax.random.normal(k_keys[1], (factor * E, E), jnp.float32) * 0.1
    wv = jax.random.normal(k_keys[2], (factor * E, E), jnp.float32) * 0.1
    wo = jax.random.normal(k_keys[3], (E, factor * E), jnp.float32) * 0.1
    bo = jax.random.normal(k_keys[4], (E,), jnp.float32) * 0.1
    params = {"wk": wk, "wq": wq, "wv": wv, "wo": wo, "bo": bo}

    key_in = jax.random.normal(k_keys[5], (B, S, E), jnp.float32)
    query_in = jax.random.normal(k_keys[6], (B, S, E), jnp.float32)
    value_in = jax.random.normal(k_keys[7], (B, S, E), jnp.float32)

    out = self_attention_pallas(key_in, query_in, value_in, params,
                                num_heads=num_heads)
    out = jax.block_until_ready(out)

    ref = reference_self_attention(key_in, query_in, value_in, params,
                                   num_heads=num_heads)
    assert out.shape == (B, S, E)
    # Tolerance loosened vs. the pure-f32 version: matmul operands are bf16
    # (f32 accumulation + f32 softmax), per the perf review.
    assert jnp.allclose(out, ref, atol=2e-2, rtol=2e-2), (
        f"max abs diff {jnp.max(jnp.abs(out - ref))}")

    print("KERNEL_OK")
</pallas_src>

<mosaic_0001>
module attributes {stable_mosaic.version = 11 : i64} {
  func.func @_self_attention_kernel(%arg0: i32, %arg1: memref<2x8x32xbf16, #tpu.memory_space<vmem>>, %arg2: memref<2x8x32xbf16, #tpu.memory_space<vmem>>, %arg3: memref<2x8x32xbf16, #tpu.memory_space<vmem>>, %arg4: memref<32x32xbf16, #tpu.memory_space<vmem>>, %arg5: memref<32x32xbf16, #tpu.memory_space<vmem>>, %arg6: memref<32x32xbf16, #tpu.memory_space<vmem>>, %arg7: memref<32x32xbf16, #tpu.memory_space<vmem>>, %arg8: memref<1x32xf32, #tpu.memory_space<vmem>>, %arg9: memref<2x8x32xf32, #tpu.memory_space<vmem>>) attributes {dimension_semantics = [#tpu.dimension_semantics<parallel>], iteration_bounds = array<i64: 1>, scalar_prefetch = 0 : i64, scratch_operands = 0 : i64, tpu.core_type = #tpu.core_type<tc>, window_params = [{transform_indices = @transform_0, window_bounds = array<i64: 2, 8, 32>}, {transform_indices = @transform_1, window_bounds = array<i64: 2, 8, 32>}, {transform_indices = @transform_2, window_bounds = array<i64: 2, 8, 32>}, {pipeline_mode = #tpu.pipeline_mode<synchronous>, transform_indices = @transform_3, window_bounds = array<i64: 32, 32>}, {pipeline_mode = #tpu.pipeline_mode<synchronous>, transform_indices = @transform_4, window_bounds = array<i64: 32, 32>}, {pipeline_mode = #tpu.pipeline_mode<synchronous>, transform_indices = @transform_5, window_bounds = array<i64: 32, 32>}, {pipeline_mode = #tpu.pipeline_mode<synchronous>, transform_indices = @transform_6, window_bounds = array<i64: 32, 32>}, {pipeline_mode = #tpu.pipeline_mode<synchronous>, transform_indices = @transform_7, window_bounds = array<i64: 1, 32>}, {transform_indices = @transform_8, window_bounds = array<i64: 2, 8, 32>}]} {
    %c0 = arith.constant 0 : index
    %c0_0 = arith.constant 0 : index
    %c0_1 = arith.constant 0 : index
    %0 = vector.load %arg1[%c0, %c0_0, %c0_1] : memref<2x8x32xbf16, #tpu.memory_space<vmem>>, vector<2x8x32xbf16>
    %1 = vector.shape_cast %0 : vector<2x8x32xbf16> to vector<16x32xbf16>
    %c0_2 = arith.constant 0 : index
    %c0_3 = arith.constant 0 : index
    %c0_4 = arith.constant 0 : index
    %2 = vector.load %arg2[%c0_2, %c0_3, %c0_4] : memref<2x8x32xbf16, #tpu.memory_space<vmem>>, vector<2x8x32xbf16>
    %3 = vector.shape_cast %2 : vector<2x8x32xbf16> to vector<16x32xbf16>
    %c0_5 = arith.constant 0 : index
    %c0_6 = arith.constant 0 : index
    %c0_7 = arith.constant 0 : index
    %4 = vector.load %arg3[%c0_5, %c0_6, %c0_7] : memref<2x8x32xbf16, #tpu.memory_space<vmem>>, vector<2x8x32xbf16>
    %5 = vector.shape_cast %4 : vector<2x8x32xbf16> to vector<16x32xbf16>
    %c0_8 = arith.constant 0 : index
    %c0_9 = arith.constant 0 : index
    %6 = vector.load %arg5[%c0_8, %c0_9] : memref<32x32xbf16, #tpu.memory_space<vmem>>, vector<32x32xbf16>
    %cst = arith.constant dense<0.000000e+00> : vector<16x32xf32>
    %7 = tpu.matmul %3, %6, %cst {dimension_numbers = #tpu.dot_dimension_numbers<[1], [0], [0], [1], [0, 0, 1, 1], [], []>} : vector<16x32xbf16>, vector<32x32xbf16>, vector<16x32xf32> -> vector<16x32xf32>
    %c0_10 = arith.constant 0 : index
    %c0_11 = arith.constant 0 : index
    %8 = vector.load %arg4[%c0_10, %c0_11] : memref<32x32xbf16, #tpu.memory_space<vmem>>, vector<32x32xbf16>
    %cst_12 = arith.constant dense<0.000000e+00> : vector<16x32xf32>
    %9 = tpu.matmul %1, %8, %cst_12 {dimension_numbers = #tpu.dot_dimension_numbers<[1], [0], [0], [1], [0, 0, 1, 1], [], []>} : vector<16x32xbf16>, vector<32x32xbf16>, vector<16x32xf32> -> vector<16x32xf32>
    %c0_13 = arith.constant 0 : index
    %c0_14 = arith.constant 0 : index
    %10 = vector.load %arg6[%c0_13, %c0_14] : memref<32x32xbf16, #tpu.memory_space<vmem>>, vector<32x32xbf16>
    %cst_15 = arith.constant dense<0.000000e+00> : vector<16x32xf32>
    %11 = tpu.matmul %5, %10, %cst_15 {dimension_numbers = #tpu.dot_dimension_numbers<[1], [0], [0], [1], [0, 0, 1, 1], [], []>} : vector<16x32xbf16>, vector<32x32xbf16>, vector<16x32xf32> -> vector<16x32xf32>
    %12 = arith.truncf %7 : vector<16x32xf32> to vector<16x32xbf16>
    %13 = vector.extract_strided_slice %12 {offsets = [0, 0], sizes = [16, 8], strides = [1, 1]} : vector<16x32xbf16> to vector<16x8xbf16>
    %14 = vector.shape_cast %13 : vector<16x8xbf16> to vector<2x8x8xbf16>
    %15 = vector.extract_strided_slice %12 {offsets = [0, 8], sizes = [16, 8], strides = [1, 1]} : vector<16x32xbf16> to vector<16x8xbf16>
    %16 = vector.shape_cast %15 : vector<16x8xbf16> to vector<2x8x8xbf16>
    %17 = vector.extract_strided_slice %12 {offsets = [0, 16], sizes = [16, 8], strides = [1, 1]} : vector<16x32xbf16> to vector<16x8xbf16>
    %18 = vector.shape_cast %17 : vector<16x8xbf16> to vector<2x8x8xbf16>
    %19 = vector.extract_strided_slice %12 {offsets = [0, 24], sizes = [16, 8], strides = [1, 1]} : vector<16x32xbf16> to vector<16x8xbf16>
    %20 = vector.shape_cast %19 : vector<16x8xbf16> to vector<2x8x8xbf16>
    %21 = tpu.concatenate %14, %16, %18, %20 in 0 : vector<2x8x8xbf16>, vector<2x8x8xbf16>, vector<2x8x8xbf16>, vector<2x8x8xbf16> -> vector<8x8x8xbf16>
    %22 = arith.truncf %9 : vector<16x32xf32> to vector<16x32xbf16>
    %23 = vector.extract_strided_slice %22 {offsets = [0, 0], sizes = [16, 8], strides = [1, 1]} : vector<16x32xbf16> to vector<16x8xbf16>
    %24 = vector.shape_cast %23 : vector<16x8xbf16> to vector<2x8x8xbf16>
    %25 = vector.extract_strided_slice %22 {offsets = [0, 8], sizes = [16, 8], strides = [1, 1]} : vector<16x32xbf16> to vector<16x8xbf16>
    %26 = vector.shape_cast %25 : vector<16x8xbf16> to vector<2x8x8xbf16>
    %27 = vector.extract_strided_slice %22 {offsets = [0, 16], sizes = [16, 8], strides = [1, 1]} : vector<16x32xbf16> to vector<16x8xbf16>
    %28 = vector.shape_cast %27 : vector<16x8xbf16> to vector<2x8x8xbf16>
    %29 = vector.extract_strided_slice %22 {offsets = [0, 24], sizes = [16, 8], strides = [1, 1]} : vector<16x32xbf16> to vector<16x8xbf16>
    %30 = vector.shape_cast %29 : vector<16x8xbf16> to vector<2x8x8xbf16>
    %31 = tpu.concatenate %24, %26, %28, %30 in 0 : vector<2x8x8xbf16>, vector<2x8x8xbf16>, vector<2x8x8xbf16>, vector<2x8x8xbf16> -> vector<8x8x8xbf16>
    %32 = arith.truncf %11 : vector<16x32xf32> to vector<16x32xbf16>
    %33 = vector.extract_strided_slice %32 {offsets = [0, 0], sizes = [16, 8], strides = [1, 1]} : vector<16x32xbf16> to vector<16x8xbf16>
    %34 = vector.shape_cast %33 : vector<16x8xbf16> to vector<2x8x8xbf16>
    %35 = vector.extract_strided_slice %32 {offsets = [0, 8], sizes = [16, 8], strides = [1, 1]} : vector<16x32xbf16> to vector<16x8xbf16>
    %36 = vector.shape_cast %35 : vector<16x8xbf16> to vector<2x8x8xbf16>
    %37 = vector.extract_strided_slice %32 {offsets = [0, 16], sizes = [16, 8], strides = [1, 1]} : vector<16x32xbf16> to vector<16x8xbf16>
    %38 = vector.shape_cast %37 : vector<16x8xbf16> to vector<2x8x8xbf16>
    %39 = vector.extract_strided_slice %32 {offsets = [0, 24], sizes = [16, 8], strides = [1, 1]} : vector<16x32xbf16> to vector<16x8xbf16>
    %40 = vector.shape_cast %39 : vector<16x8xbf16> to vector<2x8x8xbf16>
    %41 = tpu.concatenate %34, %36, %38, %40 in 0 : vector<2x8x8xbf16>, vector<2x8x8xbf16>, vector<2x8x8xbf16>, vector<2x8x8xbf16> -> vector<8x8x8xbf16>
    "tpu.trace_start"() <{level = 10 : i32, message = "bqd,bkd->bqk"}> : () -> ()
    %cst_16 = arith.constant dense<0.000000e+00> : vector<8x8x8xf32>
    %42 = tpu.matmul %21, %31, %cst_16 {dimension_numbers = #tpu.dot_dimension_numbers<[2], [2], [1], [1], [0, 0, 0, 1, 1, 1], [0], [0]>} : vector<8x8x8xbf16>, vector<8x8x8xbf16>, vector<8x8x8xf32> -> vector<8x8x8xf32>
    "tpu.trace_stop"() : () -> ()
    %cst_17 = arith.constant dense<0xFF800000> : vector<8x8xf32>
    %43 = vector.multi_reduction <maximumf>, %42, %cst_17 [2] : vector<8x8x8xf32> to vector<8x8xf32>
    %44 = vector.shape_cast %43 : vector<8x8xf32> to vector<8x8x1xf32>
    %45 = vector.broadcast %44 : vector<8x8x1xf32> to vector<8x8x8xf32>
    %46 = arith.subf %42, %45 : vector<8x8x8xf32>
    %47 = math.exp %46 : vector<8x8x8xf32>
    %cst_18 = arith.constant dense<0.000000e+00> : vector<8x8xf32>
    %48 = vector.multi_reduction <add>, %47, %cst_18 [2] : vector<8x8x8xf32> to vector<8x8xf32>
    %49 = vector.shape_cast %48 : vector<8x8xf32> to vector<8x8x1xf32>
    %50 = tpu.reciprocal %49 {approx = true} : vector<8x8x1xf32> -> vector<8x8x1xf32>
    %51 = vector.broadcast %50 : vector<8x8x1xf32> to vector<8x8x8xf32>
    %52 = arith.mulf %47, %51 : vector<8x8x8xf32>
    %53 = arith.truncf %52 : vector<8x8x8xf32> to vector<8x8x8xbf16>
    "tpu.trace_start"() <{level = 10 : i32, message = "bqk,bkd->bqd"}> : () -> ()
    %cst_19 = arith.constant dense<0.000000e+00> : vector<8x8x8xf32>
    %54 = tpu.matmul %53, %41, %cst_19 {dimension_numbers = #tpu.dot_dimension_numbers<[2], [1], [1], [2], [0, 0, 0, 1, 1, 2], [0], [0]>} : vector<8x8x8xbf16>, vector<8x8x8xbf16>, vector<8x8x8xf32> -> vector<8x8x8xf32>
    "tpu.trace_stop"() : () -> ()
    %55 = vector.extract_strided_slice %54 {offsets = [0, 0, 0], sizes = [2, 8, 8], strides = [1, 1, 1]} : vector<8x8x8xf32> to vector<2x8x8xf32>
    %56 = arith.truncf %55 : vector<2x8x8xf32> to vector<2x8x8xbf16>
    %57 = vector.shape_cast %56 : vector<2x8x8xbf16> to vector<16x8xbf16>
    %58 = vector.extract_strided_slice %54 {offsets = [2, 0, 0], sizes = [2, 8, 8], strides = [1, 1, 1]} : vector<8x8x8xf32> to vector<2x8x8xf32>
    %59 = arith.truncf %58 : vector<2x8x8xf32> to vector<2x8x8xbf16>
    %60 = vector.shape_cast %59 : vector<2x8x8xbf16> to vector<16x8xbf16>
    %61 = vector.extract_strided_slice %54 {offsets = [4, 0, 0], sizes = [2, 8, 8], strides = [1, 1, 1]} : vector<8x8x8xf32> to vector<2x8x8xf32>
    %62 = arith.truncf %61 : vector<2x8x8xf32> to vector<2x8x8xbf16>
    %63 = vector.shape_cast %62 : vector<2x8x8xbf16> to vector<16x8xbf16>
    %64 = vector.extract_strided_slice %54 {offsets = [6, 0, 0], sizes = [2, 8, 8], strides = [1, 1, 1]} : vector<8x8x8xf32> to vector<2x8x8xf32>
    %65 = arith.truncf %64 : vector<2x8x8xf32> to vector<2x8x8xbf16>
    %66 = vector.shape_cast %65 : vector<2x8x8xbf16> to vector<16x8xbf16>
    %67 = tpu.concatenate %57, %60, %63, %66 in 1 : vector<16x8xbf16>, vector<16x8xbf16>, vector<16x8xbf16>, vector<16x8xbf16> -> vector<16x32xbf16>
    %c0_20 = arith.constant 0 : index
    %c0_21 = arith.constant 0 : index
    %68 = vector.load %arg7[%c0_20, %c0_21] : memref<32x32xbf16, #tpu.memory_space<vmem>>, vector<32x32xbf16>
    %cst_22 = arith.constant dense<0.000000e+00> : vector<16x32xf32>
    %69 = tpu.matmul %67, %68, %cst_22 {dimension_numbers = #tpu.dot_dimension_numbers<[1], [0], [0], [1], [0, 0, 1, 1], [], []>} : vector<16x32xbf16>, vector<32x32xbf16>, vector<16x32xf32> -> vector<16x32xf32>
    %c0_23 = arith.constant 0 : index
    %c0_24 = arith.constant 0 : index
    %70 = vector.load %arg8[%c0_23, %c0_24] : memref<1x32xf32, #tpu.memory_space<vmem>>, vector<1x32xf32>
    %71 = vector.broadcast %70 : vector<1x32xf32> to vector<16x32xf32>
    %72 = arith.addf %69, %71 : vector<16x32xf32>
    %73 = vector.shape_cast %72 : vector<16x32xf32> to vector<2x8x32xf32>
    %c0_25 = arith.constant 0 : index
    %c0_26 = arith.constant 0 : index
    %c0_27 = arith.constant 0 : index
    %74 = vector.load %arg9[%c0_25, %c0_26, %c0_27] : memref<2x8x32xf32, #tpu.memory_space<vmem>>, vector<2x8x32xf32>
    tpu.vector_store %arg9[%c0_25, %c0_26, %c0_27], %73 {strides = array<i32>} : memref<2x8x32xf32, #tpu.memory_space<vmem>>, vector<2x8x32xf32>,
    return
  }
  func.func @transform_0(%arg0: i32) -> (i32, i32, i32) {
    %c0_i32 = arith.constant 0 : i32
    %c0_i32_0 = arith.constant 0 : i32
    %c0_i32_1 = arith.constant 0 : i32
    return %arg0, %c0_i32, %c0_i32_0 : i32, i32, i32
  }
  func.func @transform_1(%arg0: i32) -> (i32, i32, i32) {
    %c0_i32 = arith.constant 0 : i32
    %c0_i32_0 = arith.constant 0 : i32
    %c0_i32_1 = arith.constant 0 : i32
    return %arg0, %c0_i32, %c0_i32_0 : i32, i32, i32
  }
  func.func @transform_2(%arg0: i32) -> (i32, i32, i32) {
    %c0_i32 = arith.constant 0 : i32
    %c0_i32_0 = arith.constant 0 : i32
    %c0_i32_1 = arith.constant 0 : i32
    return %arg0, %c0_i32, %c0_i32_0 : i32, i32, i32
  }
  func.func @transform_3(%arg0: i32) -> (i32, i32) {
    %c0_i32 = arith.constant 0 : i32
    %c0_i32_0 = arith.constant 0 : i32
    %c0_i32_1 = arith.constant 0 : i32
    return %c0_i32, %c0_i32_0 : i32, i32
  }
  func.func @transform_4(%arg0: i32) -> (i32, i32) {
    %c0_i32 = arith.constant 0 : i32
    %c0_i32_0 = arith.constant 0 : i32
    %c0_i32_1 = arith.constant 0 : i32
    return %c0_i32, %c0_i32_0 : i32, i32
  }
  func.func @transform_5(%arg0: i32) -> (i32, i32) {
    %c0_i32 = arith.constant 0 : i32
    %c0_i32_0 = arith.constant 0 : i32
    %c0_i32_1 = arith.constant 0 : i32
    return %c0_i32, %c0_i32_0 : i32, i32
  }
  func.func @transform_6(%arg0: i32) -> (i32, i32) {
    %c0_i32 = arith.constant 0 : i32
    %c0_i32_0 = arith.constant 0 : i32
    %c0_i32_1 = arith.constant 0 : i32
    return %c0_i32, %c0_i32_0 : i32, i32
  }
  func.func @transform_7(%arg0: i32) -> (i32, i32) {
    %c0_i32 = arith.constant 0 : i32
    %c0_i32_0 = arith.constant 0 : i32
    %c0_i32_1 = arith.constant 0 : i32
    return %c0_i32, %c0_i32_0 : i32, i32
  }
  func.func @transform_8(%arg0: i32) -> (i32, i32, i32) {
    %c0_i32 = arith.constant 0 : i32
    %c0_i32_0 = arith.constant 0 : i32
    %c0_i32_1 = arith.constant 0 : i32
    return %arg0, %c0_i32, %c0_i32_0 : i32, i32, i32
  }
}

</mosaic_0001>

<bundles_post_ra>
// kernel: tpu_custom_call.1
= control target key start
LH: loop header
LB: loop body
LE: loop exit
PB: predicated region body
PF: predicated region fallthrough
CT: control target
= control target key end

     0   :  { %13 = vsyncpa [#allocation3], 0  ;;  %s2086_s0 = inlined_call_operand.hbm [shape: bf16[2,8,32], index: 0, kind: input, shape index: {}]   ;;  %s2087_s1 = inlined_call_operand.hbm [shape: bf16[2,8,32], index: 1, kind: input, shape index: {}]   ;;  %s2088_s2 = inlined_call_operand.hbm [shape: bf16[2,8,32], index: 2, kind: input, shape index: {}]   ;;  %s2089_s3 = inlined_call_operand.hbm [shape: bf16[32,32], index: 3, kind: input, shape index: {}]   ;;  %s2090_s4 = inlined_call_operand.hbm [shape: bf16[32,32], index: 4, kind: input, shape index: {}]   ;;  %s2091_s5 = inlined_call_operand.hbm [shape: bf16[32,32], index: 5, kind: input, shape index: {}]   ;;  %s2092_s6 = inlined_call_operand.hbm [shape: bf16[32,32], index: 6, kind: input, shape index: {}]   ;;  %s2093_s7 = inlined_call_operand.vmem [shape: f32[1,32], index: 7, kind: input, shape index: {}]   ;;  %s2094_s8 = inlined_call_operand.hbm [shape: f32[2,8,32], index: 8, kind: output, shape index: {}]  }
   0x1   :  { %14 = vsyncpa [#allocation6], 0 }
   0x2   :  { %15 = vsyncpa [#allocation9], 0 }
   0x3   :  { %16 = vsyncpa [#allocation12], 0 }
   0x4   :  { %17 = vsyncpa [#allocation4], 0  ;;  %s1803_s27 = smov [#allocation5]   ;;  %s1804_s29 = smov [#allocation8]  }
   0x5   :  { %s35_s28 = sshll.u32 %s1803_s27, 4  ;;  %s59_s30 = sshll.u32 %s1804_s29, 4  ;;  %s36_s28 = int_to_ptr.vmem [resolvable:$true] %s35_s28  ;;  %s60_s30 = int_to_ptr.vmem [resolvable:$true] %s59_s30 }
   0x6   :  { %s1641_s9 = scalar_lea.vmem %s36_s28, 128  ;;  %p1646_p1 = scmp.lt.s32.totalorder %s36_s28, %s36_s28 }
   0x7   :  { %p1642_p0 = scmp.ne.s32.totalorder %s36_s28, %s1641_s9  ;;  %p1647_p2 = scmp.lt.s32.totalorder %s1641_s9, %s1641_s9 }
   0x9   :  { %p1648_p3 = por %p1647_p2, %p1646_p1 }
   0xb   :  { %p1649_p4 = pnand %p1648_p3, %p1642_p0 }
   0xd   :  { %1652 = shalt.err (!%p1649_p4)
}
   0xe   :  { %s1805_s10 = smov 64   ;;  %s1806_s11 = smov 4  }
   0xf   :  { %41 = dma.hbm_to_vmem [thread:$0]  %s2087_s1, 128, %s36_s28, [#allocation6], %s1805_s10, %s1805_s10, %s1806_s11  }
  0x10   :  { %s1661_s14 = scalar_lea.vmem %s60_s30, 256  ;;  %p1666_p6 = scmp.lt.s32.totalorder %s60_s30, %s60_s30 }
  0x11   :  { %p1662_p5 = scmp.ne.s32.totalorder %s60_s30, %s1661_s14  ;;  %p1667_p7 = scmp.lt.s32.totalorder %s1661_s14, %s1661_s14 }
  0x13   :  { %p1668_p8 = por %p1667_p7, %p1666_p6 }
  0x15   :  { %p1669_p9 = pnand %p1668_p8, %p1662_p5 }
  0x17   :  { %1672 = shalt.err (!%p1669_p9)
}
  0x18   :  { %65 = dma.hbm_to_vmem [thread:$0]  %s2089_s3, 256, %s60_s30, [#allocation9], %s1805_s10, %s1805_s10, %s1806_s11  }
  0x19   :  { %s1807_s17 = smov [#allocation11]   ;;  %s1808_s19 = smov [#allocation2]  }
  0x1a   :  { %s83_s18 = sshll.u32 %s1807_s17, 4  ;;  %s23_s20 = sshll.u32 %s1808_s19, 4  ;;  %s84_s18 = int_to_ptr.vmem [resolvable:$true] %s83_s18  ;;  %s24_s20 = int_to_ptr.vmem [resolvable:$true] %s23_s20 }
  0x1b   :  { %s1681_s1 = scalar_lea.vmem %s84_s18, 256  ;;  %p1686_p11 = scmp.lt.s32.totalorder %s84_s18, %s84_s18 }
  0x1c   :  { %p1682_p10 = scmp.ne.s32.totalorder %s84_s18, %s1681_s1  ;;  %p1687_p12 = scmp.lt.s32.totalorder %s1681_s1, %s1681_s1 }
  0x1e   :  { %p1688_p13 = por %p1687_p12, %p1686_p11 }
  0x20   :  { %p1689_p0 = pnand %p1688_p13, %p1682_p10 }
  0x22   :  { %1692 = shalt.err (!%p1689_p0)
}
  0x23   :  { %89 = dma.hbm_to_vmem [thread:$0]  %s2091_s5, 256, %s84_s18, [#allocation12], %s1805_s10, %s1805_s10, %s1806_s11  }
  0x24   :  { %s1701_s3 = scalar_lea.vmem %s24_s20, 128  ;;  %p1706_p2 = scmp.lt.s32.totalorder %s24_s20, %s24_s20 }
  0x25   :  { %p1702_p1 = scmp.ne.s32.totalorder %s24_s20, %s1701_s3  ;;  %p1707_p3 = scmp.lt.s32.totalorder %s1701_s3, %s1701_s3 }
  0x27   :  { %p1708_p4 = por %p1707_p3, %p1706_p2 }
  0x29   :  { %p1709_p5 = pnand %p1708_p4, %p1702_p1 }
  0x2b   :  { %1712 = shalt.err (!%p1709_p5)
}
  0x2c   :  { %29 = dma.hbm_to_vmem [thread:$0]  %s2086_s0, 128, %s24_s20, [#allocation3], %s1805_s10, %s1805_s10, %s1806_s11  }
  0x2d   :  { %s1809_s25 = smov [#allocation7]   ;;  %s1810_s27 = smov [#allocation10]  }
  0x2e   :  { %s47_s26 = sshll.u32 %s1809_s25, 4  ;;  %s71_s28 = sshll.u32 %s1810_s27, 4  ;;  %s48_s26 = int_to_ptr.vmem [resolvable:$true] %s47_s26  ;;  %s72_s28 = int_to_ptr.vmem [resolvable:$true] %s71_s28 }
  0x2f   :  { %s1721_s5 = scalar_lea.vmem %s48_s26, 128  ;;  %p1726_p7 = scmp.lt.s32.totalorder %s48_s26, %s48_s26 }
  0x30   :  { %p1722_p6 = scmp.ne.s32.totalorder %s48_s26, %s1721_s5  ;;  %p1727_p8 = scmp.lt.s32.totalorder %s1721_s5, %s1721_s5 }
  0x32   :  { %p1728_p9 = por %p1727_p8, %p1726_p7 }
  0x34   :  { %p1729_p10 = pnand %p1728_p9, %p1722_p6 }
  0x36   :  { %1732 = shalt.err (!%p1729_p10)
}
  0x37   :  { %53 = dma.hbm_to_vmem [thread:$0]  %s2088_s2, 128, %s48_s26, [#allocation6], %s1805_s10, %s1805_s10, %s1806_s11  }
  0x38   :  { %s1741_s0 = scalar_lea.vmem %s72_s28, 256  ;;  %p1746_p12 = scmp.lt.s32.totalorder %s72_s28, %s72_s28 }
  0x39   :  { %p1742_p11 = scmp.ne.s32.totalorder %s72_s28, %s1741_s0  ;;  %p1747_p13 = scmp.lt.s32.totalorder %s1741_s0, %s1741_s0 }
  0x3b   :  { %p1748_p0 = por %p1747_p13, %p1746_p12 }
  0x3d   :  { %p1749_p1 = pnand %p1748_p0, %p1742_p11 }
  0x3f   :  { %1752 = shalt.err (!%p1749_p1)
}
  0x40   :  { %77 = dma.hbm_to_vmem [thread:$0]  %s2090_s4, 256, %s72_s28, [#allocation9], %s1805_s10, %s1805_s10, %s1806_s11  }
  0x41   :  { %s1811_s13 = smov [#allocation13]  }
  0x42   :  { %s95_s14 = sshll.u32 %s1811_s13, 4  ;;  %s96_s14 = int_to_ptr.vmem [resolvable:$true] %s95_s14 }
  0x43   :  { %s1761_s15 = scalar_lea.vmem %s96_s14, 256  ;;  %p1766_p3 = scmp.lt.s32.totalorder %s96_s14, %s96_s14 }
  0x44   :  { %p1762_p2 = scmp.ne.s32.totalorder %s96_s14, %s1761_s15  ;;  %p1767_p4 = scmp.lt.s32.totalorder %s1761_s15, %s1761_s15 }
  0x46   :  { %p1768_p5 = por %p1767_p4, %p1766_p3 }
  0x48   :  { %p1769_p6 = pnand %p1768_p5, %p1762_p2 }
  0x4a   :  { %1772 = shalt.err (!%p1769_p6)
}
  0x4b   :  { %101 = dma.hbm_to_vmem [thread:$0]  %s2092_s6, 256, %s96_s14, [#allocation12], %s1805_s10, %s1805_s10, %s1806_s11  }
  0x4c   :  { %1793 = dma.done.wait [#allocation3], 128  }
  0x4d   :  { %1794 = vsyncadd [#allocation3], 4294967168 }
  0x4e   :  { %1795 = dma.done.wait [#allocation6], 256  }
  0x4f   :  { %1796 = vsyncadd [#allocation6], 4294967040 }
  0x50   :  { %1797 = dma.done.wait [#allocation9], 512  }
  0x51   :  { %1798 = vsyncadd [#allocation9], 4294966784 }
  0x52   :  { %1799 = dma.done.wait [#allocation12], 512  }
  0x53   :  { %1800 = vsyncadd [#allocation12], 4294966784  ;;  %v1812_v0 = vmov 0.0   ;;  %vm1813_vm0 = vmmov 0   ;;  %v1590_v1 = vld [vmem:[#allocation10 + $0x8] sm:$0xff]   ;;  %v1591_v2 = vld [vmem:[#allocation8 + $0x8] sm:$0xff]  }
  0x54   :  { %1443 = vmatprep.subr.bf16.mxu0 %v1812_v0  ;;  %1451 = vmatprep.subr.bf16.mxu1 %v1812_v0  ;;  %v1592_v3 = vld [vmem:[#allocation10] sm:$0xff]   ;;  %v1593_v4 = vld [vmem:[#allocation8] sm:$0xff]   ;;  %vm153_vm1 = vcmask 261120   ;;  %v1595_v6 = vld [vmem:[#allocation2] sm:$0xff]   ;;  %vm382_vm2 = vcmask 64512   ;;  %s1814_s4 = smov 120  }
  0x55   :  { %1447 = vmatprep.mubr.msk.bf16.mxu0 %vm1813_vm0, %v1812_v0  ;;  %1455 = vmatprep.mubr.msk.bf16.mxu1 %vm1813_vm0, %v1812_v0  ;;  %v1594_v5 = vld [vmem:[#allocation5] sm:$0xff]   ;;  %v1596_v7 = vld [vmem:[#allocation11 + $0x8] sm:$0xff]   ;;  %v1597_v8 = vld [vmem:[#allocation11] sm:$0xff]   ;;  %s1815_s6 = smov 112   ;;  %s1816_s10 = smov 104   ;;  %vm850_vm3 = vcmask 1043456  }
  0x56   :  { %1444 = vmatpush3.bf16.msra.mxu0 %v1590_v1  ;;  %1452 = vmatpush3.bf16.msra.mxu1 %v1591_v2  ;;  %v1598_v9 = vld [vmem:[#allocation7] sm:$0xff]   ;;  %s1817_s11 = smov 8   ;;  %s1818_s17 = smov 16   ;;  %vm1253_vm4 = vcmask 130048   ;;  %vm1256_vm5 = vcmask 195584  }
  0x57   :  { %1445 = vmatprep.subr.bf16.mxu0 %v1812_v0  ;;  %1453 = vmatprep.subr.bf16.mxu1 %v1812_v0  ;;  %s1819_s18 = smov 24   ;;  %s1820_s1 = smov [#allocation14]  }
  0x58   :  { %s1332_s21 = sshll.u32 %s1820_s1, 4  ;;  %s1333_s21 = int_to_ptr.vmem [resolvable:$true] %s1332_s21 }
  0x59   :  { %s1773_s22 = scalar_lea.vmem %s1333_s21, 256  ;;  %p1778_p8 = scmp.lt.s32.totalorder %s1333_s21, %s1333_s21 }
  0x5a   :  { %1446 = vmatpush3.bf16.msra.mxu0 %v1592_v3  ;;  %1454 = vmatpush3.bf16.msra.mxu1 %v1593_v4  ;;  %p1774_p7 = scmp.ne.s32.totalorder %s1333_s21, %s1773_s22  ;;  %p1779_p9 = scmp.lt.s32.totalorder %s1773_s22, %s1773_s22 }
  0x5b   :  { %1459 = vmatprep.subr.bf16.mxu0 %v1812_v0  ;;  %1467 = vmatprep.subr.bf16.mxu1 %v1812_v0 }
  0x5c   :  { %p1780_p10 = por %p1779_p9, %p1778_p8 }
  0x5d   :  { %1448 = vmatmul.mubr.msk.bf16.vlgmr.msra.gmra.mxu0 %vm153_vm1, %v1594_v5  ;;  %1456 = vmatmul.mubr.msk.bf16.vlgmr.msra.gmra.mxu1 %vm153_vm1, %v1595_v6 }
  0x5e   :  { %1463 = vmatprep.mubr.msk.bf16.mxu0 %vm1813_vm0, %v1812_v0  ;;  %1469 = vmatprep.mubr.msk.bf16.mxu1 %vm1813_vm0, %v1812_v0  ;;  %p1781_p11 = pnand %p1780_p10, %p1774_p7 }
  0x5f   :  { %1460 = vmatpush3.bf16.msra.mxu0 %v1596_v7 }
  0x60   :  { %1461 = vmatprep.subr.bf16.mxu0 %v1812_v0 }
  0x63   :  { %1462 = vmatpush3.bf16.msra.mxu0 %v1597_v8 }
  0x64   :  { %1473 = vmatprep.subr.bf16.mxu0 %v1812_v0 }
  0x66   :  { %1464 = vmatmul.mubr.msk.bf16.vlgmr.msra.gmra.mxu0 %vm153_vm1, %v1598_v9 }
  0x67   :  { %1475 = vmatprep.mubr.msk.bf16.mxu0 %vm1813_vm0, %v1812_v0 }
 0x11d   :  { %v191_v10 = vpop.f32.mrf.mxu0  ;;  %v256_v12 = vpop.f32.mrf.mxu1 }
 0x11e   :  { %v1389_v11 = vpack.c.bf16 %v191_v10, %v191_v10  ;;  %v1391_v13 = vpack.c.bf16 %v256_v12, %v256_v12 }
 0x11f   :  { %v1449_v14 = vpop.f32.mrf.mxu0  ;;  %v1457_v15 = vpop.f32.mrf.mxu1 }
 0x120   :  { %334 = vrot.lane.b32.xlu1 %v1389_v11, %s1814_s4  ;;  %352 = vrot.lane.b32.xlu0 %v1391_v13, %s1814_s4  ;;  %v387_v17 = vsel %vm382_vm2, %v1391_v13, 0 }
 0x121   :  { %v194_v16 = vpop.f32.mrf.mxu0  ;;  %v259_v19 = vpop.f32.mrf.mxu1  ;;  %1468 = vmatpush3.bf16.xpose.msra.mxu1 %v387_v17 }
 0x122   :  { %v1390_v18 = vpack.c.bf16 %v194_v16, %v194_v16  ;;  %v1392_v20 = vpack.c.bf16 %v259_v19, %v259_v19  ;;  %1479 = vmatprep.subr.bf16.mxu1 %v1812_v0 }
 0x123   :  { %v1450_v21 = vpop.f32.mrf.mxu0  ;;  %v1458_v22 = vpop.f32.mrf.mxu1 }
 0x124   :  { %336 = vrot.lane.b32.xlu1 %v1390_v18, %s1814_s4  ;;  %354 = vrot.lane.b32.xlu0 %v1392_v20, %s1814_s4  ;;  %v433_v23 = vsel %vm382_vm2, %v1392_v20, 0 }
 0x125   :  { %1474 = vmatpush3.bf16.xpose.msra.mxu0 %v433_v23 }
 0x126   :  { %1485 = vmatprep.subr.bf16.mxu0 %v1812_v0  ;;  %v321_v24 = vpop.f32.mrf.mxu0 }
 0x127   :  { %v1970_v43 = vpack.c.bf16 %v321_v24, %v321_v24 }
 0x128   :  { %358 = vrot.lane.b32.xlu1 %v1392_v20, %s1815_s6  ;;  %1470 = vmatmul.mubr.msk.bf16.vlgmr.msra.gmra.mxu1 %vm382_vm2, %v1389_v11  ;;  %v1465_v25 = vpop.f32.mrf.mxu0 }
 0x129   :  { %356 = vrot.lane.b32.xlu0 %v1391_v13, %s1815_s6  ;;  %1481 = vmatprep.mubr.msk.bf16.mxu1 %vm1813_vm0, %v1812_v0  ;;  %v852_v46 = vsel %vm850_vm3, %v1970_v43, 0 }
 0x12a   :  { %v324_v26 = vpop.f32.mrf.mxu0 }
 0x12b   :  { %v1977_v45 = vpack.c.bf16 %v324_v26, %v324_v26 }
 0x12c   :  { %340 = vrot.lane.b32.xlu1 %v1390_v18, %s1815_s6  ;;  %1476 = vmatmul.mubr.msk.bf16.vlgmr.msra.gmra.mxu0 %vm382_vm2, %v1390_v18  ;;  %v1466_v27 = vpop.f32.mrf.mxu0 }
 0x12d   :  { %338 = vrot.lane.b32.xlu0 %v1389_v11, %s1815_s6  ;;  %1487 = vmatprep.mubr.msk.bf16.mxu0 %vm1813_vm0, %v1812_v0  ;;  %v898_v48 = vsel %vm850_vm3, %v1977_v45, 0 }
 0x130   :  { %362 = vrot.lane.b32.xlu1 %v1392_v20, %s1816_s10 }
 0x131   :  { %360 = vrot.lane.b32.xlu0 %v1391_v13, %s1816_s10 }
 0x134   :  { %344 = vrot.lane.b32.xlu1 %v1390_v18, %s1816_s10 }
 0x135   :  { %342 = vrot.lane.b32.xlu0 %v1389_v11, %s1816_s10 }
 0x192   :  { %v335_v28 = vpop.permute.xlu1 %334  ;;  %v353_v29 = vpop.permute.xlu0 %352 }
 0x193   :  { %v479_v30 = vsel %vm382_vm2, %v353_v29, 0 }
 0x194   :  { %1480 = vmatpush3.bf16.xpose.msra.mxu1 %v479_v30 }
 0x195   :  { %1491 = vmatprep.subr.bf16.mxu1 %v1812_v0 }
 0x196   :  { %v337_v31 = vpop.permute.xlu1 %336  ;;  %v355_v32 = vpop.permute.xlu0 %354 }
 0x197   :  { %v525_v33 = vsel %vm382_vm2, %v355_v32, 0 }
 0x198   :  { %1486 = vmatpush3.bf16.xpose.msra.mxu0 %v525_v33 }
 0x199   :  { %1497 = vmatprep.subr.bf16.mxu0 %v1812_v0 }
 0x19a   :  { %v359_v34 = vpop.permute.xlu1 %358 }
 0x19b   :  { %v357_v35 = vpop.permute.xlu0 %356  ;;  %1482 = vmatmul.mubr.msk.bf16.vlgmr.msra.gmra.mxu1 %vm382_vm2, %v335_v28  ;;  %v617_v39 = vsel %vm382_vm2, %v359_v34, 0 }
 0x19c   :  { %v571_v36 = vsel %vm382_vm2, %v357_v35, 0  ;;  %1493 = vmatprep.mubr.msk.bf16.mxu1 %vm1813_vm0, %v1812_v0 }
 0x19d   :  { %1492 = vmatpush3.bf16.xpose.msra.mxu1 %v571_v36 }
 0x19e   :  { %1503 = vmatprep.subr.bf16.mxu1 %v1812_v0  ;;  %v341_v37 = vpop.permute.xlu1 %340 }
 0x19f   :  { %v339_v38 = vpop.permute.xlu0 %338  ;;  %1488 = vmatmul.mubr.msk.bf16.vlgmr.msra.gmra.mxu0 %vm382_vm2, %v337_v31 }
 0x1a0   :  { %1498 = vmatpush3.bf16.xpose.msra.mxu0 %v617_v39  ;;  %1499 = vmatprep.mubr.msk.bf16.mxu0 %vm1813_vm0, %v1812_v0 }
 0x1a1   :  { %1509 = vmatprep.subr.bf16.mxu0 %v1812_v0 }
 0x1a2   :  { %v363_v42 = vpop.permute.xlu1 %362 }
 0x1a3   :  { %v361_v40 = vpop.permute.xlu0 %360  ;;  %v709_v44 = vsel %vm382_vm2, %v363_v42, 0 }
 0x1a4   :  { %v663_v41 = vsel %vm382_vm2, %v361_v40, 0  ;;  %1494 = vmatmul.mubr.msk.bf16.vlgmr.msra.gmra.mxu1 %vm382_vm2, %v339_v38 }
 0x1a5   :  { %1504 = vmatpush3.bf16.xpose.msra.mxu1 %v663_v41  ;;  %1505 = vmatprep.mubr.msk.bf16.mxu1 %vm1813_vm0, %v1812_v0 }
 0x1a6   :  { %1515 = vmatprep.subr.bf16.mxu1 %v1812_v0  ;;  %v345_v49 = vpop.permute.xlu1 %344 }
 0x1a7   :  { %1500 = vmatmul.mubr.msk.bf16.vlgmr.msra.gmra.mxu0 %vm382_vm2, %v341_v37  ;;  %v343_v47 = vpop.permute.xlu0 %342 }
 0x1a8   :  { %1510 = vmatpush3.bf16.xpose.msra.mxu0 %v709_v44  ;;  %1511 = vmatprep.mubr.msk.bf16.mxu0 %vm1813_vm0, %v1812_v0 }
 0x1a9   :  { %1521 = vmatprep.subr.bf16.mxu0 %v1812_v0 }
 0x1ac   :  { %1506 = vmatmul.mubr.msk.bf16.vlgmr.msra.gmra.mxu1 %vm382_vm2, %v343_v47 }
 0x1ad   :  { %1516 = vmatpush3.bf16.msra.mxu1 %v852_v46  ;;  %1517 = vmatprep.mubr.msk.bf16.mxu1 %vm1813_vm0, %v1812_v0 }
 0x1ae   :  { %1527 = vmatprep.subr.bf16.mxu1 %v1812_v0 }
 0x1af   :  { %1512 = vmatmul.mubr.msk.bf16.vlgmr.msra.gmra.mxu0 %vm382_vm2, %v345_v49 }
 0x1b0   :  { %1522 = vmatpush3.bf16.msra.mxu0 %v898_v48  ;;  %1523 = vmatprep.mubr.msk.bf16.mxu0 %vm1813_vm0, %v1812_v0 }
 0x1b1   :  { %1533 = vmatprep.subr.bf16.mxu0 %v1812_v0 }
 0x1e8   :  { %v423_v50 = vpop.f32.mrf.mxu1 }
 0x1e9   :  { %v751_v51 = vsel %vm382_vm2, %v423_v50, -inf }
 0x1ea   :  { %752 = vmax.xlane.f32.xlu0 %v751_v51  ;;  %v1471_v52 = vpop.f32.mrf.mxu1 }
 0x1ec   :  { %v426_v53 = vpop.f32.mrf.mxu1  ;;  %v469_v54 = vpop.f32.mrf.mxu0 }
 0x1ed   :  { %v754_v55 = vsel %vm382_vm2, %v469_v54, -inf }
 0x1ee   :  { %755 = vmax.xlane.f32.xlu1 %v754_v55  ;;  %v1472_v56 = vpop.f32.mrf.mxu1  ;;  %v1477_v57 = vpop.f32.mrf.mxu0 }
 0x1f0   :  { %v472_v58 = vpop.f32.mrf.mxu0 }
 0x1f2   :  { %v1478_v59 = vpop.f32.mrf.mxu0 }
 0x25b   :  { %v515_v60 = vpop.f32.mrf.mxu1 }
 0x25c   :  { %v757_v61 = vsel %vm382_vm2, %v515_v60, -inf }
 0x25d   :  { %758 = vmax.xlane.f32.xlu0 %v757_v61  ;;  %v1483_v62 = vpop.f32.mrf.mxu1 }
 0x25f   :  { %v518_v63 = vpop.f32.mrf.mxu1  ;;  %v561_v1 = vpop.f32.mrf.mxu0 }
 0x260   :  { %v760_v2 = vsel %vm382_vm2, %v561_v1, -inf }
 0x261   :  { %v1489_v3 = vpop.f32.mrf.mxu0  ;;  %761 = vmax.xlane.f32.xlu0 %v760_v2  ;;  %v1484_v4 = vpop.f32.mrf.mxu1 }
 0x263   :  { %v564_v5 = vpop.f32.mrf.mxu0 }
 0x264   :  { %v1996_v6 = vpop.f32.mrf.mxu1 }
 0x265   :  { %v763_v7 = vsel %vm382_vm2, %v1996_v6, -inf  ;;  %v1490_v8 = vpop.f32.mrf.mxu0 }
 0x266   :  { %764 = vmax.xlane.f32.xlu1 %v763_v7  ;;  %v1495_v9 = vpop.f32.mrf.mxu1 }
 0x267   :  { %v653_v11 = vpop.f32.mrf.mxu0 }
 0x268   :  { %v610_v10 = vpop.f32.mrf.mxu1  ;;  %v766_v12 = vsel %vm382_vm2, %v653_v11, -inf }
 0x269   :  { %v1501_v13 = vpop.f32.mrf.mxu0  ;;  %767 = vmax.xlane.f32.xlu0 %v766_v12 }
 0x26a   :  { %v1496_v14 = vpop.f32.mrf.mxu1 }
 0x26b   :  { %v656_v15 = vpop.f32.mrf.mxu0 }
 0x26c   :  { %v699_v16 = vpop.f32.mrf.mxu1 }
 0x26d   :  { %v769_v17 = vsel %vm382_vm2, %v699_v16, -inf  ;;  %v1502_v18 = vpop.f32.mrf.mxu0 }
 0x26e   :  { %770 = vmax.xlane.f32.xlu1 %v769_v17  ;;  %v1507_v19 = vpop.f32.mrf.mxu1 }
 0x26f   :  { %v745_v21 = vpop.f32.mrf.mxu0 }
 0x270   :  { %v702_v20 = vpop.f32.mrf.mxu1  ;;  %v772_v22 = vsel %vm382_vm2, %v745_v21, -inf }
 0x271   :  { %v1513_v23 = vpop.f32.mrf.mxu0  ;;  %773 = vmax.xlane.f32.xlu0 %v772_v22 }
 0x272   :  { %v1508_v24 = vpop.f32.mrf.mxu1 }
 0x273   :  { %v748_v25 = vpop.f32.mrf.mxu0  ;;  %v753_v30 = vpop.xlane.xlu0 %752 }
 0x274   :  { %v775_v32 = vsub.f32 %v423_v50, %v753_v30 }
 0x275   :  { %v1514_v26 = vpop.f32.mrf.mxu0 }
 0x276   :  { %v783_v34 = vmul.f32 1.442695, %v775_v32 }
 0x277   :  { %v756_v27 = vpop.xlane.xlu1 %755 }
 0x278   :  { %v776_v28 = vsub.f32 %v469_v54, %v756_v27 }
 0x27a   :  { %v785_v29 = vmul.f32 1.442695, %v776_v28 }
 0x27c   :  { %1601 = vpow2.f32 %v785_v29 }
 0x27d   :  { %1603 = vpow2.f32 %v783_v34 }
 0x27f   :  { %370 = vrot.lane.b32.xlu1 %v1970_v43, %s1814_s4 }
 0x289   :  { %v1602_v31 = vpop.eup %1601 }
 0x28a   :  { %v802_v33 = vsel %vm382_vm2, %v1602_v31, 0.0  ;;  %v1604_v35 = vpop.eup %1603 }
 0x28b   :  { %803 = vadd.xlane.f32.xlu0 %v802_v33  ;;  %v799_v36 = vsel %vm382_vm2, %v1604_v35, 0.0 }
 0x2a3   :  { %800 = vadd.xlane.f32.xlu1 %v799_v36 }
 0x2e6   :  { %v759_v37 = vpop.xlane.xlu0 %758 }
 0x2e7   :  { %v777_v38 = vsub.f32 %v515_v60, %v759_v37 }
 0x2e9   :  { %v787_v39 = vmul.f32 1.442695, %v777_v38 }
 0x2ea   :  { %v762_v40 = vpop.xlane.xlu0 %761 }
 0x2eb   :  { %1605 = vpow2.f32 %v787_v39  ;;  %v778_v41 = vsub.f32 %v561_v1, %v762_v40 }
 0x2ed   :  { %v789_v42 = vmul.f32 1.442695, %v778_v41 }
 0x2ef   :  { %1607 = vpow2.f32 %v789_v42  ;;  %v765_v52 = vpop.xlane.xlu1 %764 }
 0x2f0   :  { %v779_v53 = vsub.f32 %v1996_v6, %v765_v52 }
 0x2f2   :  { %v768_v49 = vpop.xlane.xlu0 %767  ;;  %v791_v56 = vmul.f32 1.442695, %v779_v53 }
 0x2f3   :  { %v780_v54 = vsub.f32 %v653_v11, %v768_v49 }
 0x2f5   :  { %v793_v58 = vmul.f32 1.442695, %v780_v54 }
 0x2f7   :  { %v771_v55 = vpop.xlane.xlu1 %770 }
 0x2f8   :  { %v2007_v44 = vpop.eup %1605  ;;  %v781_v57 = vsub.f32 %v699_v16, %v771_v55 }
 0x2f9   :  { %v805_v46 = vsel %vm382_vm2, %v2007_v44, 0.0 }
 0x2fa   :  { %806 = vadd.xlane.f32.xlu1 %v805_v46  ;;  %v774_v50 = vpop.xlane.xlu0 %773  ;;  %v795_v60 = vmul.f32 1.442695, %v781_v57 }
 0x2fb   :  { %v782_v59 = vsub.f32 %v745_v21, %v774_v50  ;;  %v371_v2 = vpop.permute.xlu1 %370 }
 0x2fc   :  { %v2011_v47 = vpop.eup %1607  ;;  %v944_v15 = vsel %vm850_vm3, %v371_v2, 0 }
 0x2fd   :  { %v808_v48 = vsel %vm382_vm2, %v2011_v47, 0.0  ;;  %v797_v62 = vmul.f32 1.442695, %v782_v59 }
 0x2fe   :  { %809 = vadd.xlane.f32.xlu0 %v808_v48 }
 0x30b   :  { %374 = vrot.lane.b32.xlu1 %v1970_v43, %s1815_s6 }
 0x30f   :  { %376 = vrot.lane.b32.xlu1 %v1977_v45, %s1815_s6 }
 0x314   :  { %372 = vrot.lane.b32.xlu0 %v1977_v45, %s1814_s4  ;;  %v804_v51 = vpop.xlane.xlu0 %803 }
 0x315   :  { %1609 = vrcp.f32 %v804_v51 }
 0x316   :  { %1611 = vpow2.f32 %v791_v56 }
 0x317   :  { %1613 = vpow2.f32 %v793_v58 }
 0x318   :  { %1615 = vpow2.f32 %v795_v60 }
 0x319   :  { %1617 = vpow2.f32 %v797_v62 }
 0x322   :  { %v1610_v61 = vpop.eup %1609 }
 0x323   :  { %v832_v63 = vmul.f32 %v1610_v61, %v1602_v31  ;;  %v1612_v4 = vpop.eup %1611 }
 0x324   :  { %v1614_v5 = vpop.eup %1613  ;;  %v811_v8 = vsel %vm382_vm2, %v1612_v4, 0.0 }
 0x325   :  { %v840_v1 = vpack.c.bf16 %v832_v63, %v832_v63  ;;  %v2025_v6 = vpop.eup %1615  ;;  %v814_v7 = vsel %vm382_vm2, %v1614_v5, 0.0 }
 0x326   :  { %v2029_v9 = vpop.eup %1617  ;;  %v817_v11 = vsel %vm382_vm2, %v2025_v6, 0.0 }
 0x327   :  { %1524 = vmatmul.mubr.msk.bf16.vlgmr.msra.gmra.mxu0 %vm382_vm2, %v840_v1  ;;  %v820_v10 = vsel %vm382_vm2, %v2029_v9, 0.0 }
 0x328   :  { %1535 = vmatprep.mubr.msk.bf16.mxu0 %vm1813_vm0, %v1812_v0 }
 0x32c   :  { %v801_v3 = vpop.xlane.xlu1 %800 }
 0x32d   :  { %1619 = vrcp.f32 %v801_v3 }
 0x333   :  { %815 = vadd.xlane.f32.xlu0 %v814_v7  ;;  %812 = vadd.xlane.f32.xlu1 %v811_v8 }
 0x337   :  { %821 = vadd.xlane.f32.xlu0 %v820_v10  ;;  %818 = vadd.xlane.f32.xlu1 %v817_v11 }
 0x33a   :  { %v1620_v12 = vpop.eup %1619 }
 0x33b   :  { %v831_v13 = vmul.f32 %v1620_v12, %v1604_v35 }
 0x33d   :  { %v839_v14 = vpack.c.bf16 %v831_v13, %v831_v13 }
 0x33f   :  { %1518 = vmatmul.mubr.msk.bf16.vlgmr.msra.gmra.mxu1 %vm382_vm2, %v839_v14 }
 0x340   :  { %1528 = vmatpush3.bf16.msra.mxu1 %v944_v15  ;;  %1529 = vmatprep.mubr.msk.bf16.mxu1 %vm1813_vm0, %v1812_v0 }
 0x341   :  { %1539 = vmatprep.subr.bf16.mxu1 %v1812_v0 }
 0x348   :  { %380 = vrot.lane.b32.xlu1 %v1977_v45, %s1816_s10 }
 0x34d   :  { %378 = vrot.lane.b32.xlu0 %v1970_v43, %s1816_s10 }
 0x383   :  { %v807_v16 = vpop.xlane.xlu1 %806 }
 0x384   :  { %1621 = vrcp.f32 %v807_v16 }
 0x387   :  { %v810_v17 = vpop.xlane.xlu0 %809  ;;  %v375_v21 = vpop.permute.xlu1 %374 }
 0x388   :  { %1623 = vrcp.f32 %v810_v17  ;;  %v1036_v45 = vsel %vm850_vm3, %v375_v21, 0 }
 0x38b   :  { %v373_v18 = vpop.permute.xlu0 %372  ;;  %v377_v25 = vpop.permute.xlu1 %376 }
 0x38c   :  { %v990_v19 = vsel %vm850_vm3, %v373_v18, 0  ;;  %v1082_v27 = vsel %vm850_vm3, %v377_v25, 0 }
 0x38d   :  { %1534 = vmatpush3.bf16.msra.mxu0 %v990_v19 }
 0x38e   :  { %1545 = vmatprep.subr.bf16.mxu0 %v1812_v0 }
 0x391   :  { %v1622_v20 = vpop.eup %1621 }
 0x392   :  { %v833_v22 = vmul.f32 %v1622_v20, %v2007_v44 }
 0x394   :  { %v841_v23 = vpack.c.bf16 %v833_v22, %v833_v22 }
 0x395   :  { %v1624_v24 = vpop.eup %1623 }
 0x396   :  { %1530 = vmatmul.mubr.msk.bf16.vlgmr.msra.gmra.mxu1 %vm382_vm2, %v841_v23  ;;  %v834_v43 = vmul.f32 %v1624_v24, %v2011_v47 }
 0x397   :  { %1540 = vmatpush3.bf16.msra.mxu1 %v1036_v45  ;;  %1541 = vmatprep.mubr.msk.bf16.mxu1 %vm1813_vm0, %v1812_v0 }
 0x398   :  { %v842_v26 = vpack.c.bf16 %v834_v43, %v834_v43  ;;  %1551 = vmatprep.subr.bf16.mxu1 %v1812_v0 }
 0x39a   :  { %1536 = vmatmul.mubr.msk.bf16.vlgmr.msra.gmra.mxu0 %vm382_vm2, %v842_v26 }
 0x39b   :  { %1546 = vmatpush3.bf16.msra.mxu0 %v1082_v27  ;;  %1547 = vmatprep.mubr.msk.bf16.mxu0 %vm1813_vm0, %v1812_v0 }
 0x39c   :  { %1557 = vmatprep.subr.bf16.mxu0 %v1812_v0 }
 0x3bc   :  { %v816_v28 = vpop.xlane.xlu0 %815  ;;  %v813_v29 = vpop.xlane.xlu1 %812 }
 0x3bd   :  { %1625 = vrcp.f32 %v816_v28  ;;  %v1385_v28 = vld [vmem:[%s2093_s7] ss:$0 sm:$0xff] }
 0x3be   :  { %1627 = vrcp.f32 %v813_v29 }
 0x3c0   :  { %v822_v30 = vpop.xlane.xlu0 %821  ;;  %v819_v31 = vpop.xlane.xlu1 %818 }
 0x3c1   :  { %1629 = vrcp.f32 %v822_v30 }
 0x3c2   :  { %1631 = vrcp.f32 %v819_v31 }
 0x3c4   :  { %v381_v35 = vpop.permute.xlu1 %380  ;;  %v379_v37 = vpop.permute.xlu0 %378 }
 0x3c5   :  { %v1174_v42 = vsel %vm850_vm3, %v381_v35, 0  ;;  %v1128_v44 = vsel %vm850_vm3, %v379_v37, 0 }
 0x3ca   :  { %v1626_v32 = vpop.eup %1625 }
 0x3cb   :  { %v1628_v33 = vpop.eup %1627  ;;  %v836_v34 = vmul.f32 %v1626_v32, %v1614_v5  ;;  %v1599_v5 = vld [vmem:[#allocation13 + $0x8] sm:$0xff]  }
 0x3cc   :  { %v835_v36 = vmul.f32 %v1628_v33, %v1612_v4 }
 0x3cd   :  { %v844_v38 = vpack.c.bf16 %v836_v34, %v836_v34 }
 0x3ce   :  { %v1630_v39 = vpop.eup %1629  ;;  %v843_v40 = vpack.c.bf16 %v835_v36, %v835_v36 }
 0x3cf   :  { %v1632_v41 = vpop.eup %1631  ;;  %1548 = vmatmul.mubr.msk.bf16.vlgmr.msra.gmra.mxu0 %vm382_vm2, %v844_v38  ;;  %v838_v46 = vmul.f32 %v1630_v39, %v2029_v9 }
 0x3d0   :  { %1542 = vmatmul.mubr.msk.bf16.vlgmr.msra.gmra.mxu1 %vm382_vm2, %v843_v40  ;;  %1558 = vmatpush3.bf16.msra.mxu0 %v1174_v42  ;;  %v837_v47 = vmul.f32 %v1632_v41, %v2025_v6  ;;  %v1600_v6 = vld [vmem:[#allocation13] sm:$0xff]  }
 0x3d1   :  { %1552 = vmatpush3.bf16.msra.mxu1 %v1128_v44  ;;  %1553 = vmatprep.mubr.msk.bf16.mxu1 %vm1813_vm0, %v1812_v0  ;;  %v846_v48 = vpack.c.bf16 %v838_v46, %v838_v46 }
 0x3d2   :  { %1559 = vmatprep.mubr.msk.bf16.mxu0 %vm1813_vm0, %v1812_v0  ;;  %1563 = vmatprep.subr.bf16.mxu1 %v1812_v0  ;;  %v845_v49 = vpack.c.bf16 %v837_v47, %v837_v47 }
 0x3d7   :  { %1560 = vmatmul.mubr.msk.bf16.vlgmr.msra.gmra.mxu0 %vm382_vm2, %v846_v48 }
 0x3d8   :  { %1554 = vmatmul.mubr.msk.bf16.vlgmr.msra.gmra.mxu1 %vm382_vm2, %v845_v49 }
 0x3d9   :  { %1567 = vmatprep.mubr.msk.bf16.mxu1 %vm1813_vm0, %v1812_v0  ;;  %1564 = vmatpush3.bf16.msra.mxu1 %v1599_v5 }
 0x3da   :  { %1565 = vmatprep.subr.bf16.mxu1 %v1812_v0 }
 0x3dd   :  { %1566 = vmatpush3.bf16.msra.mxu1 %v1600_v6 }
 0x3e7   :  { %v934_v50 = vpop.f32.mrf.mxu0 }
 0x3e9   :  { %v1525_v51 = vpop.f32.mrf.mxu0 }
 0x3eb   :  { %v937_v52 = vpop.f32.mrf.mxu0 }
 0x3ed   :  { %v1526_v53 = vpop.f32.mrf.mxu0 }
 0x3ff   :  { %v888_v54 = vpop.f32.mrf.mxu1 }
 0x400   :  { %v1395_v55 = vpack.c.bf16 %v934_v50, %v888_v54 }
 0x401   :  { %v1519_v56 = vpop.f32.mrf.mxu1 }
 0x403   :  { %v891_v57 = vpop.f32.mrf.mxu1 }
 0x405   :  { %v1520_v58 = vpop.f32.mrf.mxu1 }
 0x456   :  { %v980_v59 = vpop.f32.mrf.mxu1 }
 0x458   :  { %v1531_v60 = vpop.f32.mrf.mxu1 }
 0x45a   :  { %v983_v61 = vpop.f32.mrf.mxu1  ;;  %v1026_v62 = vpop.f32.mrf.mxu0 }
 0x45b   :  { %v1396_v63 = vpack.c.bf16 %v1026_v62, %v980_v59 }
 0x45c   :  { %v1532_v1 = vpop.f32.mrf.mxu1  ;;  %v1537_v2 = vpop.f32.mrf.mxu0 }
 0x45d   :  { %1234 = vrot.lane.b32.xlu0 %v1396_v63, %s1817_s11 }
 0x45e   :  { %v1029_v3 = vpop.f32.mrf.mxu0 }
 0x460   :  { %v1538_v4 = vpop.f32.mrf.mxu0 }
 0x48f   :  { %v1118_v7 = vpop.f32.mrf.mxu0 }
 0x490   :  { %v1072_v8 = vpop.f32.mrf.mxu1 }
 0x491   :  { %v1397_v9 = vpack.c.bf16 %v1118_v7, %v1072_v8  ;;  %v1549_v10 = vpop.f32.mrf.mxu0 }
 0x492   :  { %v1543_v11 = vpop.f32.mrf.mxu1 }
 0x493   :  { %1241 = vrot.lane.b32.xlu1 %v1397_v9, %s1818_s17  ;;  %v1121_v12 = vpop.f32.mrf.mxu0 }
 0x494   :  { %v1075_v13 = vpop.f32.mrf.mxu1 }
 0x495   :  { %v1550_v14 = vpop.f32.mrf.mxu0 }
 0x496   :  { %v1544_v15 = vpop.f32.mrf.mxu1 }
 0x497   :  { %v1210_v16 = vpop.f32.mrf.mxu0 }
 0x498   :  { %v1164_v17 = vpop.f32.mrf.mxu1 }
 0x499   :  { %v1398_v18 = vpack.c.bf16 %v1210_v16, %v1164_v17  ;;  %v1561_v19 = vpop.f32.mrf.mxu0 }
 0x49a   :  { %v1555_v20 = vpop.f32.mrf.mxu1 }
 0x49b   :  { %1248 = vrot.lane.b32.xlu0 %v1398_v18, %s1819_s18  ;;  %v1213_v0 = vpop.f32.mrf.mxu0 }
 0x49c   :  { %v1167_v21 = vpop.f32.mrf.mxu1 }
 0x49d   :  { %v1562_v22 = vpop.f32.mrf.mxu0 }
 0x49e   :  { %v1556_v23 = vpop.f32.mrf.mxu1 }
 0x4cf   :  { %v1235_v24 = vpop.permute.xlu0 %1234 }
 0x4d0   :  { %v1252_v43 = vsel %vm382_vm2, %v1395_v55, %v1235_v24 }
 0x505   :  { %v1242_v45 = vpop.permute.xlu1 %1241 }
 0x506   :  { %v1255_v25 = vsel %vm1253_vm4, %v1252_v43, %v1242_v45 }
 0x50d   :  { %v1249_v26 = vpop.permute.xlu0 %1248 }
 0x50e   :  { %v1258_v27 = vsel %vm1256_vm5, %v1255_v25, %v1249_v26 }
 0x50f   :  { %1568 = vmatmul.mubr.msk.bf16.vlgmr.msra.gmra.mxu1 %vm153_vm1, %v1258_v27 }
 0x5cf   :  { %v1318_v29 = vpop.f32.mrf.mxu1 }
 0x5d0   :  { %v1319_v30 = vadd.f32 %v1385_v28, %v1318_v29 }
 0x5d1   :  { %v1569_v31 = vpop.f32.mrf.mxu1 }
 0x5d2   :  { %1325 = vst.msk [vmem:[#allocation14] sm:$0xff] %vm153_vm1, %v1319_v30 }
 0x5d3   :  { %v1321_v32 = vpop.f32.mrf.mxu1 }
 0x5d4   :  { %v1322_v33 = vadd.f32 %v1385_v28, %v1321_v32 }
 0x5d5   :  { %v1570_v34 = vpop.f32.mrf.mxu1 }
 0x5d6   :  { %1326 = vst.msk [vmem:[#allocation14 + $0x8] sm:$0xff] %vm153_vm1, %v1322_v33 }
 0x5d7   :  { %1784 = shalt.err (!%p1781_p11)
}
 0x5d8   :  { %s1821_s7 = smov 128  }
 0x5d9   :  { %1338 = dma.vmem_to_hbm [thread:$0]  %s1333_s21, 256, %s2094_s8, [#allocation4], %s1821_s7, %s1821_s7, %s1817_s11  }
 0x5da   :  { %1801 = dma.done.wait [#allocation4], 256  }
 0x5db   :  { %1802 = vsyncadd [#allocation4], 4294967040 }
 0x5dc   :  { %1342 = vsyncpa [#allocation3], 1 }
 0x5dd   :  { %1343 = vsyncpa [#allocation6], 1 }
 0x5de   :  { %1344 = vsyncpa [#allocation9], 1 }
 0x5df   :  { %1345 = vsyncpa [#allocation12], 1 }
 0x5e0   :  { %1346 = vsyncpa [#allocation4], 1 }

</bundles_post_ra>
